<compile_context>
chip_gen: v7x
topology: tpu7x:2x2x1
jax: 0.10.0
libtpu: 0.0.40
codegen_flags: <defaults>
</compile_context>

<pallas_src>
import functools

import jax
import jax.numpy as jnp
from jax import lax
from jax.experimental import pallas as pl
from jax.experimental.pallas import tpu as pltpu


def _upsampler_conv_kernel(x_ref, w_ref, b_ref, o_ref, pad_ref, col_ref, *,
                           H, W, act):
    """3x3 SAME conv for one batch element, channels-on-sublane layout.

    x_ref:   (1, Cin, H*W)            input, spatial flattened onto lanes
    w_ref:   (Cout, 9*Cin)            weight, K ordered as (kh, kw, cin)
    b_ref:   (Cout, 1)                bias
    o_ref:   (1, Cout, H*W)           conv output (lane-dense)
    pad_ref: (Cin, (W+1)+H*W+(W+1))   flat slab, W+1 zero lanes on each side
    col_ref: (9*Cin, H*W)             im2col buffer
    """
    Cin = x_ref.shape[1]
    HW = H * W
    base = W + 1  # lane offset of flat pixel (y=0, x=0) inside pad_ref

    # ------------------------------------------------------------------
    # Fused zero padding: zero the slab, drop the image in the middle.
    # The W+1 zero lanes on each side make every row shift (dh in {-1,0,1})
    # read zeros when it walks off the top/bottom of the image.
    # (Re-zeroed every step: scratch is per-core, so no cross-step init.)
    # ------------------------------------------------------------------
    pad_ref[...] = jnp.zeros_like(pad_ref)
    pad_ref[:, base:base + HW] = x_ref[0].astype(pad_ref.dtype)

    # x-coordinate of every lane, for masking the left/right column wrap.
    x_idx = lax.broadcasted_iota(jnp.int32, (Cin, HW), 1) % W
    edge_ok = {-1: x_idx > 0, 0: None, 1: x_idx < (W - 1)}

    # ------------------------------------------------------------------
    # Build the (9*Cin, H*W) im2col buffer: one static lane-shifted slab per
    # tap. Row shifts (dh) fall into the zero pad; column shifts (dw != 0)
    # need a mask at the row edges (the flat shift wraps into the
    # neighbouring row). No window reshapes, no relayout copies.
    # ------------------------------------------------------------------
    for kh in range(3):
        for kw in range(3):
            dh, dw = kh - 1, kw - 1
            off = base + dh * W + dw
            patch = pad_ref[:, off:off + HW]                 # (Cin, HW)
            if edge_ok[dw] is not None:
                patch = jnp.where(edge_ok[dw], patch, 0.0)
            t = kh * 3 + kw
            col_ref[t * Cin:(t + 1) * Cin, :] = patch

    # ------------------------------------------------------------------
    # One K = 9*Cin matmul on the MXU, f32 accumulation; fused bias + act.
    # ------------------------------------------------------------------
    acc = jnp.dot(w_ref[...], col_ref[...],
                  preferred_element_type=jnp.float32)        # (Cout, HW)
    acc = acc + b_ref[...].astype(jnp.float32)               # (Cout, 1) bcast
    if act == "relu":
        acc = jnp.maximum(acc, 0.0)
    # act is None -> identity (matches Upsampler default activation=None)

    o_ref[0] = acc.astype(o_ref.dtype)


def conv3x3_flat_pallas(x_flat, w2d, b2d, H, W, act=None):
    """3x3 SAME conv. x_flat: (N, Cin, H*W) NCHW-flat. Returns (N, Cout, H*W)."""
    N, Cin, HW = x_flat.shape
    Cout = w2d.shape[0]
    pad_len = HW + 2 * (W + 1)

    kernel = functools.partial(_upsampler_conv_kernel, H=H, W=W, act=act)

    # TODO(synk): for large images, tile H with a 1-row halo and raise
    # vmem_limit_bytes so whole-image blocks never exceed v7x's 64 MiB VMEM.
    return pl.pallas_call(
        kernel,
        out_shape=jax.ShapeDtypeStruct((N, Cout, HW), x_flat.dtype),
        grid_spec=pltpu.PrefetchScalarGridSpec(
            num_scalar_prefetch=0,
            grid=(N,),   # "parallel": feeds both TCs on v7x; 2 steps elsewhere
            in_specs=[
                pl.BlockSpec((1, Cin, HW), lambda n: (n, 0, 0)),
                # Constant block index -> weight/bias stay resident in VMEM.
                pl.BlockSpec((Cout, 9 * Cin), lambda n: (0, 0)),
                pl.BlockSpec((Cout, 1), lambda n: (0, 0)),
            ],
            out_specs=pl.BlockSpec((1, Cout, HW), lambda n: (n, 0, 0)),
            scratch_shapes=[
                pltpu.VMEM((Cin, pad_len), jnp.float32),     # padded slab
                pltpu.VMEM((9 * Cin, HW), jnp.float32),      # im2col
            ],
        ),
        compiler_params=pltpu.CompilerParams(
            dimension_semantics=("parallel",)),
    )(x_flat, w2d, b2d)


def upsampler_forward(x_nchw, w_oihw, bias, scale_factor, activation=None):
    """Full Upsampler forward. Input/output in NCHW like PyTorch."""
    N, Cin, H, W = x_nchw.shape
    Cout = w_oihw.shape[0]
    r = scale_factor
    C = Cout // (r * r)

    # Free contiguous reshape — no layout change, no extra HBM pass.
    x_flat = x_nchw.reshape(N, Cin, H * W)
    # One-time parameter prep (576 floats): OIHW -> (O, (kh,kw,I)) flat K.
    w2d = jnp.transpose(w_oihw, (0, 2, 3, 1)).reshape(Cout, 9 * Cin)
    b2d = bias.reshape(Cout, 1)

    y = conv3x3_flat_pallas(x_flat, w2d, b2d, H, W, act=activation)

    # PixelShuffle (PyTorch order c_full = c*r^2 + i*r + j): tiny layout op.
    # TODO(synk): fold this sublane->lane interleave into the kernel's store
    # once Mosaic reliably lowers the required multi-dim relayout.
    y = y.reshape(N, C, r, r, H, W)
    y = jnp.transpose(y, (0, 1, 4, 2, 5, 3))  # (N, C, H, r, W, r)
    return y.reshape(N, C, H * r, W * r)


def _reference(x_nchw, w_oihw, bias, scale_factor, activation=None):
    y = jax.lax.conv_general_dilated(
        x_nchw, w_oihw, window_strides=(1, 1), padding="SAME",
        dimension_numbers=("NCHW", "OIHW", "NCHW"))
    y = y + bias[None, :, None, None]
    if activation == "relu":
        y = jnp.maximum(y, 0.0)
    N, Cr2, H, W = y.shape
    r = scale_factor
    C = Cr2 // (r * r)
    y = y.reshape(N, C, r, r, H, W)
    y = jnp.transpose(y, (0, 1, 4, 2, 5, 3))  # (N, C, H, r, W, r)
    return y.reshape(N, C, H * r, W * r)


if __name__ == "__main__":
    # Module config: Upsampler(in_channels=4, out_channels=4, scale_factor=2,
    #                          groups=1, activation=None)
    in_channels = 4
    out_channels = 4
    scale_factor = 2
    conv_out = scale_factor ** 2 * out_channels  # 16
    N, H, W = 2, 16, 16

    key = jax.random.PRNGKey(0)
    kx, kw_, kb = jax.random.split(key, 3)
    x = jax.random.normal(kx, (N, in_channels, H, W), dtype=jnp.float32)
    # Deterministic synthetic parameters (Conv2d weight OIHW, bias).
    w = jax.random.normal(kw_, (conv_out, in_channels, 3, 3),
                          dtype=jnp.float32) * 0.1
    b = jax.random.normal(kb, (conv_out,), dtype=jnp.float32) * 0.1

    out = upsampler_forward(x, w, b, scale_factor, activation=None)
    out = jax.block_until_ready(out)

    ref = _reference(x, w, b, scale_factor, activation=None)
    assert out.shape == (N, out_channels, H * scale_factor, W * scale_factor)
    assert jnp.allclose(out, ref, atol=1e-4, rtol=1e-4)

    print("KERNEL_OK")
</pallas_src>

<mosaic_0001>
module attributes {stable_mosaic.version = 11 : i64} {
  func.func @_upsampler_conv_kernel(%arg0: i32, %arg1: memref<1x4x256xf32, #tpu.memory_space<vmem>>, %arg2: memref<16x36xf32, #tpu.memory_space<vmem>>, %arg3: memref<16x1xf32, #tpu.memory_space<vmem>>, %arg4: memref<1x16x256xf32, #tpu.memory_space<vmem>>, %arg5: memref<4x290xf32, #tpu.memory_space<vmem>>, %arg6: memref<36x256xf32, #tpu.memory_space<vmem>>) attributes {dimension_semantics = [#tpu.dimension_semantics<parallel>], iteration_bounds = array<i64: 2>, scalar_prefetch = 0 : i64, scratch_operands = 2 : i64, tpu.core_type = #tpu.core_type<tc>, window_params = [{transform_indices = @transform_0, window_bounds = array<i64: 1, 4, 256>}, {pipeline_mode = #tpu.pipeline_mode<synchronous>, transform_indices = @transform_1, window_bounds = array<i64: 16, 36>}, {pipeline_mode = #tpu.pipeline_mode<synchronous>, transform_indices = @transform_2, window_bounds = array<i64: 16, 1>}, {transform_indices = @transform_3, window_bounds = array<i64: 1, 16, 256>}]} {
    %cst = arith.constant 0.000000e+00 : f32
    %0 = vector.broadcast %cst : f32 to vector<4x290xf32>
    %c0 = arith.constant 0 : index
    %c0_0 = arith.constant 0 : index
    %1 = vector.load %arg5[%c0, %c0_0] : memref<4x290xf32, #tpu.memory_space<vmem>>, vector<4x290xf32>
    tpu.vector_store %arg5[%c0, %c0_0], %0 {strides = array<i32>} : memref<4x290xf32, #tpu.memory_space<vmem>>, vector<4x290xf32>,
    %c0_1 = arith.constant 0 : index
    %c0_2 = arith.constant 0 : index
    %c0_3 = arith.constant 0 : index
    %2 = vector.load %arg1[%c0_1, %c0_2, %c0_3] : memref<1x4x256xf32, #tpu.memory_space<vmem>>, vector<1x4x256xf32>
    %3 = vector.shape_cast %2 : vector<1x4x256xf32> to vector<4x256xf32>
    %c0_4 = arith.constant 0 : index
    %c17 = arith.constant 17 : index
    %4 = vector.load %arg5[%c0_4, %c17] : memref<4x290xf32, #tpu.memory_space<vmem>>, vector<4x256xf32>
    tpu.vector_store %arg5[%c0_4, %c17], %3 {strides = array<i32>} : memref<4x290xf32, #tpu.memory_space<vmem>>, vector<4x256xf32>,
    %5 = tpu.iota {dimensions = array<i32: 1>} : vector<4x256xi32>
    %c16_i32 = arith.constant 16 : i32
    %c0_i32 = arith.constant 0 : i32
    %6 = arith.cmpi eq, %c16_i32, %c0_i32 : i32
    %c1_i32 = arith.constant 1 : i32
    %7 = arith.select %6, %c1_i32, %c16_i32 : i32
    %8 = vector.broadcast %7 : i32 to vector<4x256xi32>
    %9 = arith.remsi %5, %8 : vector<4x256xi32>
    %c0_i32_5 = arith.constant 0 : i32
    %10 = vector.broadcast %c0_i32_5 : i32 to vector<4x256xi32>
    %11 = arith.cmpi ne, %9, %10 : vector<4x256xi32>
    %c0_i32_6 = arith.constant 0 : i32
    %12 = vector.broadcast %c0_i32_6 : i32 to vector<4x256xi32>
    %13 = arith.cmpi slt, %9, %12 : vector<4x256xi32>
    %c0_i32_7 = arith.constant 0 : i32
    %14 = arith.cmpi slt, %7, %c0_i32_7 : i32
    %15 = vector.broadcast %14 : i1 to vector<4x256xi1>
    %16 = vector.broadcast %15 : vector<4x256xi1> to vector<4x256xi1>
    %17 = arith.xori %13, %16 : vector<4x256xi1>
    %18 = arith.andi %17, %11 : vector<4x256xi1>
    %19 = vector.broadcast %7 : i32 to vector<4x256xi32>
    %20 = arith.addi %9, %19 : vector<4x256xi32>
    %21 = arith.select %18, %20, %9 : vector<4x256xi1>, vector<4x256xi32>
    %c0_i32_8 = arith.constant 0 : i32
    %22 = vector.broadcast %c0_i32_8 : i32 to vector<4x256xi32>
    %23 = arith.cmpi sgt, %21, %22 : vector<4x256xi32>
    %c15_i32 = arith.constant 15 : i32
    %24 = vector.broadcast %c15_i32 : i32 to vector<4x256xi32>
    %25 = arith.cmpi slt, %21, %24 : vector<4x256xi32>
    %c0_9 = arith.constant 0 : index
    %c0_10 = arith.constant 0 : index
    %26 = vector.load %arg5[%c0_9, %c0_10] : memref<4x290xf32, #tpu.memory_space<vmem>>, vector<4x256xf32>
    %cst_11 = arith.constant 0.000000e+00 : f32
    %27 = vector.broadcast %cst_11 : f32 to vector<4x256xf32>
    %28 = arith.select %23, %26, %27 : vector<4x256xi1>, vector<4x256xf32>
    %c0_12 = arith.constant 0 : index
    %c0_13 = arith.constant 0 : index
    %29 = vector.load %arg6[%c0_12, %c0_13] : memref<36x256xf32, #tpu.memory_space<vmem>>, vector<4x256xf32>
    tpu.vector_store %arg6[%c0_12, %c0_13], %28 {strides = array<i32>} : memref<36x256xf32, #tpu.memory_space<vmem>>, vector<4x256xf32>,
    %c0_14 = arith.constant 0 : index
    %c1 = arith.constant 1 : index
    %30 = vector.load %arg5[%c0_14, %c1] : memref<4x290xf32, #tpu.memory_space<vmem>>, vector<4x256xf32>
    %c4 = arith.constant 4 : index
    %c0_15 = arith.constant 0 : index
    %31 = vector.load %arg6[%c4, %c0_15] : memref<36x256xf32, #tpu.memory_space<vmem>>, vector<4x256xf32>
    tpu.vector_store %arg6[%c4, %c0_15], %30 {strides = array<i32>} : memref<36x256xf32, #tpu.memory_space<vmem>>, vector<4x256xf32>,
    %c0_16 = arith.constant 0 : index
    %c2 = arith.constant 2 : index
    %32 = vector.load %arg5[%c0_16, %c2] : memref<4x290xf32, #tpu.memory_space<vmem>>, vector<4x256xf32>
    %cst_17 = arith.constant 0.000000e+00 : f32
    %33 = vector.broadcast %cst_17 : f32 to vector<4x256xf32>
    %34 = arith.select %25, %32, %33 : vector<4x256xi1>, vector<4x256xf32>
    %c8 = arith.constant 8 : index
    %c0_18 = arith.constant 0 : index
    %35 = vector.load %arg6[%c8, %c0_18] : memref<36x256xf32, #tpu.memory_space<vmem>>, vector<4x256xf32>
    tpu.vector_store %arg6[%c8, %c0_18], %34 {strides = array<i32>} : memref<36x256xf32, #tpu.memory_space<vmem>>, vector<4x256xf32>,
    %c0_19 = arith.constant 0 : index
    %c16 = arith.constant 16 : index
    %36 = vector.load %arg5[%c0_19, %c16] : memref<4x290xf32, #tpu.memory_space<vmem>>, vector<4x256xf32>
    %cst_20 = arith.constant 0.000000e+00 : f32
    %37 = vector.broadcast %cst_20 : f32 to vector<4x256xf32>
    %38 = arith.select %23, %36, %37 : vector<4x256xi1>, vector<4x256xf32>
    %c12 = arith.constant 12 : index
    %c0_21 = arith.constant 0 : index
    %39 = vector.load %arg6[%c12, %c0_21] : memref<36x256xf32, #tpu.memory_space<vmem>>, vector<4x256xf32>
    tpu.vector_store %arg6[%c12, %c0_21], %38 {strides = array<i32>} : memref<36x256xf32, #tpu.memory_space<vmem>>, vector<4x256xf32>,
    %c0_22 = arith.constant 0 : index
    %c17_23 = arith.constant 17 : index
    %40 = vector.load %arg5[%c0_22, %c17_23] : memref<4x290xf32, #tpu.memory_space<vmem>>, vector<4x256xf32>
    %c16_24 = arith.constant 16 : index
    %c0_25 = arith.constant 0 : index
    %41 = vector.load %arg6[%c16_24, %c0_25] : memref<36x256xf32, #tpu.memory_space<vmem>>, vector<4x256xf32>
    tpu.vector_store %arg6[%c16_24, %c0_25], %40 {strides = array<i32>} : memref<36x256xf32, #tpu.memory_space<vmem>>, vector<4x256xf32>,
    %c0_26 = arith.constant 0 : index
    %c18 = arith.constant 18 : index
    %42 = vector.load %arg5[%c0_26, %c18] : memref<4x290xf32, #tpu.memory_space<vmem>>, vector<4x256xf32>
    %cst_27 = arith.constant 0.000000e+00 : f32
    %43 = vector.broadcast %cst_27 : f32 to vector<4x256xf32>
    %44 = arith.select %25, %42, %43 : vector<4x256xi1>, vector<4x256xf32>
    %c20 = arith.constant 20 : index
    %c0_28 = arith.constant 0 : index
    %45 = vector.load %arg6[%c20, %c0_28] : memref<36x256xf32, #tpu.memory_space<vmem>>, vector<4x256xf32>
    tpu.vector_store %arg6[%c20, %c0_28], %44 {strides = array<i32>} : memref<36x256xf32, #tpu.memory_space<vmem>>, vector<4x256xf32>,
    %c0_29 = arith.constant 0 : index
    %c32 = arith.constant 32 : index
    %46 = vector.load %arg5[%c0_29, %c32] : memref<4x290xf32, #tpu.memory_space<vmem>>, vector<4x256xf32>
    %cst_30 = arith.constant 0.000000e+00 : f32
    %47 = vector.broadcast %cst_30 : f32 to vector<4x256xf32>
    %48 = arith.select %23, %46, %47 : vector<4x256xi1>, vector<4x256xf32>
    %c24 = arith.constant 24 : index
    %c0_31 = arith.constant 0 : index
    %49 = vector.load %arg6[%c24, %c0_31] : memref<36x256xf32, #tpu.memory_space<vmem>>, vector<4x256xf32>
    tpu.vector_store %arg6[%c24, %c0_31], %48 {strides = array<i32>} : memref<36x256xf32, #tpu.memory_space<vmem>>, vector<4x256xf32>,
    %c0_32 = arith.constant 0 : index
    %c33 = arith.constant 33 : index
    %50 = vector.load %arg5[%c0_32, %c33] : memref<4x290xf32, #tpu.memory_space<vmem>>, vector<4x256xf32>
    %c28 = arith.constant 28 : index
    %c0_33 = arith.constant 0 : index
    %51 = vector.load %arg6[%c28, %c0_33] : memref<36x256xf32, #tpu.memory_space<vmem>>, vector<4x256xf32>
    tpu.vector_store %arg6[%c28, %c0_33], %50 {strides = array<i32>} : memref<36x256xf32, #tpu.memory_space<vmem>>, vector<4x256xf32>,
    %c0_34 = arith.constant 0 : index
    %c34 = arith.constant 34 : index
    %52 = vector.load %arg5[%c0_34, %c34] : memref<4x290xf32, #tpu.memory_space<vmem>>, vector<4x256xf32>
    %cst_35 = arith.constant 0.000000e+00 : f32
    %53 = vector.broadcast %cst_35 : f32 to vector<4x256xf32>
    %54 = arith.select %25, %52, %53 : vector<4x256xi1>, vector<4x256xf32>
    %c32_36 = arith.constant 32 : index
    %c0_37 = arith.constant 0 : index
    %55 = vector.load %arg6[%c32_36, %c0_37] : memref<36x256xf32, #tpu.memory_space<vmem>>, vector<4x256xf32>
    tpu.vector_store %arg6[%c32_36, %c0_37], %54 {strides = array<i32>} : memref<36x256xf32, #tpu.memory_space<vmem>>, vector<4x256xf32>,
    %c0_38 = arith.constant 0 : index
    %c0_39 = arith.constant 0 : index
    %56 = vector.load %arg2[%c0_38, %c0_39] : memref<16x36xf32, #tpu.memory_space<vmem>>, vector<16x36xf32>
    %c0_40 = arith.constant 0 : index
    %c0_41 = arith.constant 0 : index
    %57 = vector.load %arg6[%c0_40, %c0_41] : memref<36x256xf32, #tpu.memory_space<vmem>>, vector<36x256xf32>
    %cst_42 = arith.constant dense<0.000000e+00> : vector<16x256xf32>
    %58 = tpu.matmul %56, %57, %cst_42 {dimension_numbers = #tpu.dot_dimension_numbers<[1], [0], [0], [1], [0, 0, 1, 1], [], []>} : vector<16x36xf32>, vector<36x256xf32>, vector<16x256xf32> -> vector<16x256xf32>
    %c0_43 = arith.constant 0 : index
    %c0_44 = arith.constant 0 : index
    %59 = vector.load %arg3[%c0_43, %c0_44] : memref<16x1xf32, #tpu.memory_space<vmem>>, vector<16x1xf32>
    %60 = vector.broadcast %59 : vector<16x1xf32> to vector<16x256xf32>
    %61 = arith.addf %58, %60 : vector<16x256xf32>
    %c0_45 = arith.constant 0 : index
    %c0_46 = arith.constant 0 : index
    %c0_47 = arith.constant 0 : index
    %62 = vector.load %arg4[%c0_45, %c0_46, %c0_47] : memref<1x16x256xf32, #tpu.memory_space<vmem>>, vector<1x16x256xf32>
    %63 = vector.shape_cast %62 : vector<1x16x256xf32> to vector<16x256xf32>
    %64 = vector.shape_cast %61 : vector<16x256xf32> to vector<1x16x256xf32>
    tpu.vector_store %arg4[%c0_45, %c0_46, %c0_47], %64 {strides = array<i32>} : memref<1x16x256xf32, #tpu.memory_space<vmem>>, vector<1x16x256xf32>,
    return
  }
  func.func @transform_0(%arg0: i32) -> (i32, i32, i32) {
    %c0_i32 = arith.constant 0 : i32
    %c0_i32_0 = arith.constant 0 : i32
    %c0_i32_1 = arith.constant 0 : i32
    return %arg0, %c0_i32, %c0_i32_0 : i32, i32, i32
  }
  func.func @transform_1(%arg0: i32) -> (i32, i32) {
    %c0_i32 = arith.constant 0 : i32
    %c0_i32_0 = arith.constant 0 : i32
    %c0_i32_1 = arith.constant 0 : i32
    return %c0_i32, %c0_i32_0 : i32, i32
  }
  func.func @transform_2(%arg0: i32) -> (i32, i32) {
    %c0_i32 = arith.constant 0 : i32
    %c0_i32_0 = arith.constant 0 : i32
    %c0_i32_1 = arith.constant 0 : i32
    return %c0_i32, %c0_i32_0 : i32, i32
  }
  func.func @transform_3(%arg0: i32) -> (i32, i32, i32) {
    %c0_i32 = arith.constant 0 : i32
    %c0_i32_0 = arith.constant 0 : i32
    %c0_i32_1 = arith.constant 0 : i32
    return %arg0, %c0_i32, %c0_i32_0 : i32, i32, i32
  }
}

</mosaic_0001>

<bundles_post_ra>
// kernel: tpu_custom_call.1
= control target key start
LH: loop header
LB: loop body
LE: loop exit
PB: predicated region body
PF: predicated region fallthrough
CT: control target
= control target key end

     0   :  { %8 = vsyncpa [#allocation5], 0  ;;  %s1072_s0 = inlined_call_operand.vmem [shape: f32[2,4,256], index: 0, kind: input, shape index: {}]   ;;  %s1073_s1 = inlined_call_operand.hbm [shape: f32[16,36], index: 1, kind: input, shape index: {}]   ;;  %s1074_s2 = inlined_call_operand.vmem [shape: f32[16,1], index: 2, kind: input, shape index: {}]   ;;  %s1075_s3 = inlined_call_operand.hbm [shape: f32[2,16,256], index: 3, kind: output, shape index: {}]  }
   0x1   :  { %9 = vsyncpa [#allocation6], 0 }
   0x2   :  { %11 = vsyncpa [#allocation6 + $0x1], 0  ;;  %s854_s12 = smov 0   ;;  %s856_s13 = smov 0  }
   0x3   :  { %s858_s14 = smov 0   ;;  %s860_s15 = smov 0  }
   0x4 LB: > { %s875_s16 = sadd.s32 4294967295, %s815_s15   ;;  %s616_s17 = sadd.s32 4294967294, %s815_s15   ;;  %s815_s15 = sphi %s860_s15, %s1099_s15   ;;  %s811_s14 = sphi %s858_s14, %s1098_s14   ;;  %s807_s13 = sphi %s856_s13, %s1097_s13   ;;  %s803_s12 = sphi %s854_s12, %s1096_s12  }
   0x5   : > { %s879_s18 = sadd.s32 1, %s815_s15   ;;  %s92_s19 = sadd.s32 1, %s811_s14 }
   0x6   : > { %s89_s20 = ssub.s32 %s815_s15, %s879_s18  ;;  %p102_p0 = scmp.ne.s32.totalorder %s811_s14, %s807_s13 }
   0x7   : > { %p90_p1 = scmp.eq.s32.totalorder %s89_s20, 0  ;;  %p103_p2 = scmp.eq.s32.totalorder %s875_s16, 1 }
   0x8   : > { %p108_p3 = scmp.ne.s32.totalorder %s807_s13, %s803_s12  ;;  %p109_p4 = scmp.eq.s32.totalorder %s616_s17, 1 }
   0x9   : > { %s890_s21 = scalar_select %p90_p1, %s811_s14, %s92_s19  }
   0xa   : > { %p892_p5 = por %p103_p2, %p102_p0  ;;  %p896_p6 = por %p109_p4, %p108_p3 }
   0xb   : > { %p617_p7 = scmp.ge.s32.totalorder %s815_s15, 1  ;;  %p116_p8 = scmp.lt.s32.totalorder %s815_s15, 3 }
   0xc   : > { %s1079_s22 = scalar_select %p892_p5, 1, 0 }
   0xd   : > { %s1080_s23 = scalar_select %p896_p6, 1, 0 }
   0xe   : > { %p1076_p9 = scmp.eq.s32.totalorder %s875_s16, 0  ;;  %p903_p10 = pnand %p617_p7, %p116_p8 }
   0xf   : > { %s817_s25 = smov [#allocation4]   ;;  %s721_s30 = scalar_lea.hbm %s1073_s1, 256 }
  0x10   : > { %s1081_s24 = scalar_select %p903_p10, 1, 0 }
  0x11   : > { %s128_s26 = sshll.u32 %s817_s25, 4  ;;  %p656_p11 = pneg %p903_p10  ;;  %s129_s26 = int_to_ptr.vmem [resolvable:$true] %s128_s26 }
  0x12   : > { %p722_p13 = scmp.ne.s32.totalorder %s1073_s1, %s721_s30  ;;  %p728_p3 = scmp.lt.u32.totalorder %s721_s30, %s1073_s1 }
  0x13   : > { %p911_p12 = pnand %p1076_p9, %p656_p11 }
  0x15   : > { %p723_p0 = pneg %p911_p12 }
  0x17   : > { %p724_p1 = pnand %p723_p0, %p722_p13 }
  0x19   : > { %p725_p2 = pneg %p724_p1 }
  0x1b   : > { %p730_p4 = pnand %p728_p3, %p725_p2 }
  0x1d   : > { %733 = shalt.err (!%p730_p4)
}
  0x1e   : > { %s734_s8 = scalar_lea.vmem %s129_s26, 256  ;;  %p742_p9 = scmp.lt.s32.totalorder %s129_s26, %s129_s26 }
  0x1f   : > { %p735_p7 = scmp.ne.s32.totalorder %s129_s26, %s734_s8  ;;  %p743_p6 = scmp.lt.s32.totalorder %s734_s8, %s734_s8 }
  0x21   : > { %p737_p8 = pnand %p735_p7, %p723_p0  ;;  %p744_p5 = por %p743_p6, %p742_p9 }
  0x23   : > { %p738_p11 = pneg %p737_p8 }
  0x25   : > { %p745_p10 = pnand %p744_p5, %p738_p11 }
  0x27   : > { %748 = shalt.err (!%p745_p10)
}
  0x28   : > { %s818_s9 = smov 128   ;;  %s819_s10 = smov 8  }
  0x29   : > { %659 = dma.hbm_to_vmem [thread:$0]  (!%p911_p12), %s1073_s1, 256, %s129_s26, [#allocation5], %s818_s9, %s818_s9, %s819_s10  }
  0x2a   : > { %p1083_p13 = scmp.ne.s32.totalorder %s1081_s24, 0 }
  0x2b   : > { %p1084_p1 = scmp.eq.s32.totalorder (!%p1083_p13), %s875_s16, 0 }
  0x2c   : > { %155 = sbr.rel (%p1083_p13) target bundleno = 586 (0x24a), region = 32 }
  0x33   : > { %794 = dma.done.wait (%p1084_p1), [#allocation5], 256   ;;  %p1085_p0 = pmov %p1084_p1 }
  0x34   : > { %p179_p5 = scmp.lt.s32.totalorder %s875_s16, 1  ;;  %vm185_vm0 = vcmask 273408   ;;  %v820_v0 = vmov 0.0   ;;  %s821_s27 = smov 17   ;;  %v202_v2 = vlaneseq  ;;  %vm196_vm1 = vcmask 1043592   ;;  %v422_v26 = vld [vmem:[%s1074_s2 + $0x8] sm:$0xff] }
  0x35   : > { %796 = vsyncadd (%p1085_p0), [#allocation5], 4294967040  ;;  %184 = vst [vmem:[#allocation2] sm:$0xff] %v820_v0  ;;  %511 = vmatprep.mubr.f32.mxu0 %v820_v0  ;;  %517 = vmatprep.mubr.f32.mxu1 %v820_v0  ;;  %vm197_vm2 = vcmask 1047556   ;;  %vm192_vm3 = vcmask 138240   ;;  %vm200_vm4 = vcmask 134144  }
  0x36   : > { %186 = vst.msk [vmem:[#allocation2 + $0x8] sm:$0xf] %vm185_vm0, %v820_v0  ;;  %s180_s19 = scalar_select %p179_p5, %s875_s16, 1  ;;  %v942_v3 = vand.u32 127, %v202_v2  ;;  %vm198_vm5 = vmor %vm197_vm2, %vm196_vm1  ;;  %v830_v25 = vmov 0   ;;  %v421_v27 = vld [vmem:[%s1074_s2] sm:$0xff] }
  0x37   : > { %s822_s28 = smov 96   ;;  %s823_s29 = smov 112   ;;  %716 = vset.pattern.permute.xlu0 %v830_v25  ;;  %715 = vset.pattern.permute.xlu1 %v830_v25  ;;  %vm253_vm8 = vcmask 1039360   ;;  %vm382_vm9 = vcmask 777216   ;;  %vm291_vm10 = vcmask 916480   ;;  %vm271_vm11 = vcmask 1031168  }
  0x38   : > { %s634_s20 = sshll.u32 %s180_s19, 3  ;;  %v945_v7 = vadd.s32 128, %v942_v3  ;;  %v209_v8 = vand.u32 15, %v942_v3  ;;  %s824_s30 = smov 111   ;;  %vm335_vm14 = vcmask 900096   ;;  %vm361_vm15 = vcmask 785408  }
  0x39   : > { %s183_s26 = scalar_lea.vmem %s1072_s0, %s634_s20  ;;  %s825_s4 = smov 126   ;;  %vm317_vm0 = vcmask 908288   ;;  %vm400_vm1 = vcmask 769024   ;;  %vm440_vm2 = vcmask 1043456  }
  0x3a   : > { %v187_v1 = vld [vmem:[%s183_s26] sm:$0xff]  ;;  %v216_v9 = vand.u32 15, %v945_v7  ;;  %vm951_vm6 = vcmp.gt.s32.totalorder %v209_v8, 0  ;;  %s826_s5 = smov 110   ;;  %s827_s6 = smov 127   ;;  %vm990_vm12 = vcmp.lt.s32.totalorder %v209_v8, 15 }
  0x3b   : > { %189 = vrot.lane.b32.xlu0 %v187_v1, %s821_s27  ;;  %s828_s7 = smov 95   ;;  %s829_s8 = smov 94  }
  0x3c   : > { %vm959_vm7 = vcmp.gt.s32.totalorder %v216_v9, 0  ;;  %vm996_vm13 = vcmp.lt.s32.totalorder %v216_v9, 15  ;;  %s176_s19 = sand.u32 1, %s807_s13   ;;  %s635_s26 = sshll.u32 %s875_s16, 9 }
  0x3d   : > { %s622_s20 = sshll.u32 %s176_s19, 5  ;;  %s1031_s16 = scalar_lea.sflag [#allocation6], %s176_s19 }
  0x3e   : > { %s178_s25 = scalar_lea.vmem [#allocation7], %s622_s20  ;;  %p1094_p9 = scmp.ne.s32.totalorder %s1079_s22, 0 }
  0x3f   : > { %s542_s24 = sshll.u32 %s178_s25, 4  ;;  %s1024_s24 = int_to_ptr.vmem [resolvable:$true] %s542_s24 }
  0xad   : > { %v190_v4 = vpop.permute.xlu0 %189 }
  0xae   : > { %v191_v5 = vrot.slane %v190_v4, 4 }
  0xb0   : > { %v193_v6 = vsel %vm192_vm3, %v191_v5, %v190_v4  ;;  %201 = vst.msk [vmem:[#allocation2 + $0x8] sm:$0xf] %vm200_vm4, %v191_v5  ;;  %vm433_vm3 = vcmask 293888  }
  0xb1   : > { %199 = vst.msk [vmem:[#allocation2] sm:$0xff] %vm198_vm5, %v193_v6 }
  0xb7   : > { %v351_v10 = vld [vmem:[#allocation2 + $0x8] sm:$0xf] }
  0xb8   : > { %v281_v11 = vld [vmem:[#allocation2 + $0x8] sm:$0xf]  ;;  %359 = vrot.lane.b32.xlu0 %v351_v10, %s822_s28  ;;  %v241_v13 = vld [vmem:[#allocation2] sm:$0xff] }
  0xb9   : > { %289 = vrot.lane.b32.xlu1 %v281_v11, %s823_s29  ;;  %v284_v15 = vcombine.high %v241_v13, %v241_v13  ;;  %v237_v16 = vsel %vm951_vm6, %v241_v13, 0.0  ;;  %v307_v17 = vld [vmem:[#allocation2 + $0x8] sm:$0xf]  ;;  %v245_v23 = vcombine.low %v241_v13, %v241_v13 }
  0xba   : > { %v261_v18 = vld [vmem:[#allocation2 + $0x8] sm:$0xf]  ;;  %239 = vst [vmem:[#allocation3] sm:$0xf] %v237_v16 }
  0xbb   : > { %v238_v19 = vsel %vm959_vm7, %v284_v15, 0.0  ;;  %v325_v20 = vld [vmem:[#allocation2 + $0x8] sm:$0xf] }
  0xbc   : > { %315 = vrot.lane.b32.xlu0 %v307_v17, %s824_s30  ;;  %240 = vst [vmem:[#allocation3 + $0x8] sm:$0xf] %v238_v19  ;;  %v719_v21 = vld [vmem:[#allocation2 + $0x8] ss:$0 sps:$4 sm:$0xff]  }
  0xbd   : > { %269 = vrot.lane.b32.xlu1 %v261_v18, %s825_s4  ;;  %v720_v22 = vld [vmem:[#allocation2 + $0x8] ss:$0 sps:$4 sm:$0xff]  }
  0xbe   : > { %v390_v24 = vld [vmem:[#allocation2 + $0x8] sm:$0xf] }
  0xc0   : > { %249 = vrot.lane.b32.xlu0 %v241_v13, %s827_s6 }
  0xc1   : > { %333 = vrot.lane.b32.xlu1 %v325_v20, %s826_s5 }
  0xc4   : > { %265 = vrot.lane.b32.xlu0 %v241_v13, %s825_s4 }
  0xc5   : > { %285 = vrot.lane.b32.xlu1 %v241_v13, %s823_s29 }
  0xc8   : > { %329 = vrot.lane.b32.xlu0 %v241_v13, %s826_s5 }
  0xc9   : > { %355 = vrot.lane.b32.xlu1 %v241_v13, %s822_s28 }
  0xcc   : > { %378 = vrot.lane.b32.xlu0 %v241_v13, %s828_s7 }
  0xcd   : > { %251 = vrot.lane.b32.xlu1 %v719_v21, %s827_s6 }
  0xd0   : > { %287 = vrot.lane.b32.xlu0 %v284_v15, %s823_s29  ;;  %s1029_s29 = scalar_lea.hbm %s1075_s3, %s635_s26 }
  0xd1   : > { %380 = vrot.lane.b32.xlu1 %v720_v22, %s828_s7 }
  0xd4   : > { %267 = vrot.lane.b32.xlu0 %v284_v15, %s825_s4  ;;  %s831_s4 = smov [#allocation7]  }
  0xd5   : > { %247 = vrot.lane.b32.xlu1 %v245_v23, %s827_s6 }
  0xd8   : > { %331 = vrot.lane.b32.xlu0 %v284_v15, %s826_s5  ;;  %s753_s5 = sshll.u32 %s831_s4, 4  ;;  %s754_s5 = int_to_ptr.vmem [resolvable:$false] %s753_s5 }
  0xd9   : > { %357 = vrot.lane.b32.xlu1 %v284_v15, %s822_s28  ;;  %s755_s6 = scalar_lea.vmem %s754_s5, 1024  ;;  %p756_p2 = scmp.lt.s32.totalorder %s1024_s24, %s754_s5 }
  0xdc   : > { %311 = vrot.lane.b32.xlu0 %v241_v13, %s824_s30 }
  0xdd   : > { %313 = vrot.lane.b32.xlu1 %v284_v15, %s824_s30  ;;  %s749_s30 = scalar_lea.vmem %s1024_s24, 512 }
  0xde   : > { %p750_p6 = scmp.ne.s32.totalorder %s1024_s24, %s749_s30  ;;  %p757_p3 = scmp.lt.s32.totalorder %s755_s6, %s749_s30 }
  0xe0   : > { %396 = vrot.lane.b32.xlu0 %v284_v15, %s829_s8  ;;  %p751_p10 = pnand %p750_p6, %p1094_p9  ;;  %p758_p4 = por %p757_p3, %p756_p2 }
  0xe1   : > { %376 = vrot.lane.b32.xlu1 %v245_v23, %s828_s7 }
  0xe2   : > { %p752_p12 = pneg %p751_p10 }
  0xe4   : > { %394 = vrot.lane.b32.xlu0 %v241_v13, %s829_s8  ;;  %p759_p7 = pnand %p758_p4, %p752_p12 }
  0xe5   : > { %398 = vrot.lane.b32.xlu1 %v390_v24, %s829_s8 }
  0xe8   : > { %430 = vperm.xlu0 %716, %v422_v26  }
  0xe9   : > { %425 = vperm.xlu1 %715, %v421_v27  }
 0x12a   : > { %v360_v28 = vpop.permute.xlu0 %359 }
 0x12b   : > { %v290_v29 = vpop.permute.xlu1 %289 }
 0x12e   : > { %v977_v30 = vpop.permute.xlu0 %315 }
 0x12f   : > { %v270_v31 = vpop.permute.xlu1 %269 }
 0x132   : > { %v250_v33 = vpop.permute.xlu0 %249 }
 0x133   : > { %v334_v32 = vpop.permute.xlu1 %333 }
 0x136   : > { %v266_v35 = vpop.permute.xlu0 %265 }
 0x137   : > { %v286_v34 = vpop.permute.xlu1 %285 }
 0x13a   : > { %v330_v37 = vpop.permute.xlu0 %329 }
 0x13b   : > { %v356_v36 = vpop.permute.xlu1 %355 }
 0x13e   : > { %v979_v39 = vpop.permute.xlu0 %378 }
 0x13f   : > { %v252_v38 = vpop.permute.xlu1 %251 }
 0x140   : > { %v255_v40 = vsel %vm253_vm8, %v250_v33, %v252_v38 }
 0x141   : > { %259 = vst [vmem:[#allocation3 + $0x8] sm:$0xf0] %v255_v40 }
 0x142   : > { %v288_v42 = vpop.permute.xlu0 %287 }
 0x143   : > { %v381_v41 = vpop.permute.xlu1 %380  ;;  %v292_v44 = vsel %vm291_vm10, %v286_v34, %v288_v42  ;;  %v293_v45 = vsel %vm291_vm10, %v288_v42, %v290_v29 }
 0x144   : > { %v384_v43 = vsel %vm382_vm9, %v979_v39, %v381_v41  ;;  %v296_v46 = vsel %vm951_vm6, %v292_v44, 0.0  ;;  %v297_v47 = vsel %vm959_vm7, %v293_v45, 0.0 }
 0x145   : > { %388 = vst [vmem:[#allocation3 + $0x38] sm:$0xf0] %v384_v43  ;;  %v300_v48 = vrot.slane %v296_v46, 4  ;;  %v301_v49 = vrot.slane %v297_v47, 4 }
 0x146   : > { %v268_v52 = vpop.permute.xlu0 %267 }
 0x147   : > { %v248_v53 = vpop.permute.xlu1 %247  ;;  %304 = vst [vmem:[#allocation3 + $0x10] sm:$0xf0] %v300_v48  ;;  %305 = vst [vmem:[#allocation3 + $0x18] sm:$0xf0] %v301_v49  ;;  %v272_v54 = vsel %vm271_vm11, %v266_v35, %v268_v52  ;;  %v273_v55 = vsel %vm271_vm11, %v268_v52, %v270_v31  ;;  %v410_v35 = vld [vmem:[#allocation4 + $0x8] sm:$0xff] }
 0x148   : > { %v254_v56 = vsel %vm253_vm8, %v248_v53, %v250_v33  ;;  %v276_v57 = vsel %vm990_vm12, %v272_v54, 0.0  ;;  %v277_v58 = vsel %vm996_vm13, %v273_v55, 0.0  ;;  %v412_v12 = vld [vmem:[#allocation3 + $0x8] sm:$0xff] }
 0x149   : > { %258 = vst [vmem:[#allocation3] sm:$0xf0] %v254_v56  ;;  %278 = vst [vmem:[#allocation3 + $0x10] sm:$0xf] %v276_v57 }
 0x14a   : > { %279 = vst [vmem:[#allocation3 + $0x18] sm:$0xf] %v277_v58  ;;  %v332_v59 = vpop.permute.xlu0 %331 }
 0x14b   : > { %v358_v60 = vpop.permute.xlu1 %357  ;;  %v336_v61 = vsel %vm335_vm14, %v330_v37, %v332_v59  ;;  %v337_v62 = vsel %vm335_vm14, %v332_v59, %v334_v32  ;;  %v409_v32 = vld [vmem:[#allocation4] sm:$0xff] }
 0x14c   : > { %v362_v63 = vsel %vm361_vm15, %v356_v36, %v358_v60  ;;  %v363_v0 = vsel %vm361_vm15, %v358_v60, %v360_v28  ;;  %v340_v1 = vsel %vm990_vm12, %v336_v61, 0.0  ;;  %v341_v2 = vsel %vm996_vm13, %v337_v62, 0.0 }
 0x14d   : > { %v366_v3 = vsel %vm951_vm6, %v362_v63, 0.0  ;;  %v367_v4 = vsel %vm959_vm7, %v363_v0, 0.0  ;;  %v344_v5 = vrot.slane %v340_v1, 4  ;;  %v345_v6 = vrot.slane %v341_v2, 4 }
 0x14e   : > { %368 = vst [vmem:[#allocation3 + $0x30] sm:$0xf] %v366_v3  ;;  %369 = vst [vmem:[#allocation3 + $0x38] sm:$0xf] %v367_v4  ;;  %v312_v7 = vpop.permute.xlu0 %311 }
 0x14f   : > { %v314_v8 = vpop.permute.xlu1 %313  ;;  %348 = vst [vmem:[#allocation3 + $0x20] sm:$0xf0] %v344_v5  ;;  %349 = vst [vmem:[#allocation3 + $0x28] sm:$0xf0] %v345_v6 }
 0x150   : > { %v318_v9 = vsel %vm317_vm0, %v312_v7, %v314_v8  ;;  %v319_v10 = vsel %vm317_vm0, %v314_v8, %v977_v30  ;;  %v411_v11 = vld [vmem:[#allocation3] sm:$0xff]  ;;  %v413_v14 = vld [vmem:[#allocation3 + $0x10] sm:$0xff] }
 0x151   : > { %322 = vst [vmem:[#allocation3 + $0x20] sm:$0xf] %v318_v9  ;;  %323 = vst [vmem:[#allocation3 + $0x28] sm:$0xf] %v319_v10  ;;  %v414_v13 = vld [vmem:[#allocation3 + $0x18] sm:$0xff]  ;;  %v638_v16 = vpack.c.bf16 %v413_v14, %v411_v11 }
 0x152   : > { %v636_v15 = vpack.c.bf16 %v414_v13, %v412_v12  ;;  %v397_v17 = vpop.permute.xlu0 %396 }
 0x153   : > { %v377_v18 = vpop.permute.xlu1 %376 }
 0x154   : > { %v383_v19 = vsel %vm382_vm9, %v377_v18, %v979_v39  ;;  %637 = vmatprep.subr.bf16.mxu0 %v636_v15  ;;  %644 = vmatprep.subr.bf16.mxu1 %v636_v15 }
 0x155   : > { %387 = vst [vmem:[#allocation3 + $0x30] sm:$0xf0] %v383_v19  ;;  %639 = vmatpush1.bf16.msra.mxu0 %v638_v16  ;;  %647 = vmatpush1.bf16.msra.mxu1 %v638_v16  ;;  %v418_v25 = vld [vmem:[#allocation3 + $0x38] sm:$0xff] }
 0x156   : > { %v395_v20 = vpop.permute.xlu0 %394 }
 0x157   : > { %v399_v21 = vpop.permute.xlu1 %398  ;;  %v401_v22 = vsel %vm400_vm1, %v395_v20, %v397_v17 }
 0x158   : > { %v402_v23 = vsel %vm400_vm1, %v397_v17, %v399_v21  ;;  %v416_v24 = vld [vmem:[#allocation3 + $0x28] sm:$0xff]  ;;  %v405_v26 = vsel %vm990_vm12, %v401_v22, 0.0  ;;  %v415_v29 = vld [vmem:[#allocation3 + $0x20] sm:$0xff] }
 0x159   : > { %v406_v27 = vsel %vm996_vm13, %v402_v23, 0.0  ;;  %v640_v28 = vpack.c.bf16 %v418_v25, %v416_v24  ;;  %407 = vst [vmem:[#allocation3 + $0x40] sm:$0xf] %v405_v26 }
 0x15a   : > { %408 = vst [vmem:[#allocation3 + $0x48] sm:$0xf] %v406_v27 }
 0x15b   : > { %641 = vmatprep.subr.bf16.mxu0 %v640_v28  ;;  %645 = vmatprep.subr.bf16.mxu1 %v640_v28 }
 0x15c   : > { %v417_v30 = vld [vmem:[#allocation3 + $0x30] sm:$0xff] }
 0x15d   : > { %v642_v31 = vpack.c.bf16 %v417_v30, %v415_v29 }
 0x15f   : > { %643 = vmatpush1.bf16.msra.mxu0 %v642_v31  ;;  %648 = vmatpush1.bf16.msra.mxu1 %v642_v31 }
 0x160   : > { %v419_v34 = vld [vmem:[#allocation3 + $0x40] sm:$0xf] }
 0x161   : > { %v420_v33 = vld [vmem:[#allocation3 + $0x48] sm:$0xf] }
 0x162   : > { %625 = vmatprep.subr.msk.mxu0 %vm440_vm2, %v420_v33  ;;  %646 = vmatprep.subr.msk.mxu1 %vm440_vm2, %v420_v33 }
 0x163   : > { %626 = vmatpush1.msk.msra.mxu0 %vm440_vm2, %v419_v34  ;;  %649 = vmatpush1.msk.msra.mxu1 %vm440_vm2, %v419_v34 }
 0x164   : > { %627 = vmatmul.mubr.msk.f32.vlgmr.msra.gmra.mrb[0].mxu0 %vm433_vm3, %v409_v32  ;;  %628 = vmatmul.mubr.msk.f32.vlgmr.msra.gmra.mrb[0].mxu1 %vm433_vm3, %v410_v35 }
 0x167   : > { %v431_v36 = vpop.permute.xlu0 %430 }
 0x168   : > { %v426_v37 = vpop.permute.xlu1 %425 }
 0x237   : > { %v513_v38 = vpop.f32.mrb[0].mxu0  ;;  %v519_v39 = vpop.f32.mrb[0].mxu1 }
 0x238   : > { %v514_v40 = vadd.f32 %v513_v38, %v426_v37  ;;  %v520_v41 = vadd.f32 %v519_v39, %v431_v36  ;;  %v515_v42 = vpop.f32.mrb[1].mxu0  ;;  %v521_v43 = vpop.f32.mrb[1].mxu1 }
 0x239   : > { %v516_v44 = vadd.f32 %v515_v42, %v426_v37  ;;  %v522_v45 = vadd.f32 %v521_v43, %v431_v36 }
 0x23a   : > { %524 = vst [vmem:[%s178_s25] sm:$0xff] %v514_v40  ;;  %526 = vst [vmem:[%s178_s25 + $0x10] sm:$0xff] %v520_v41 }
 0x23b   : > { %525 = vst [vmem:[%s178_s25 + $0x8] sm:$0xff] %v516_v44  ;;  %527 = vst [vmem:[%s178_s25 + $0x18] sm:$0xff] %v522_v45 }
 0x23c   : > { %762 = shalt.err (!%p759_p7)
}
 0x23d   : > { %s763_s7 = scalar_lea.hbm %s1029_s29, 512  ;;  %s767_s10 = scalar_lea.hbm %s1075_s3, 1024 }
 0x23e   : > { %p764_p8 = scmp.ne.s32.totalorder %s1029_s29, %s763_s7  ;;  %p768_p1 = scmp.lt.u32.totalorder %s1029_s29, %s1075_s3 }
 0x23f   : > { %p769_p0 = scmp.lt.u32.totalorder %s767_s10, %s763_s7  ;;  %p771_p6 = scmp.lt.u32.totalorder %s763_s7, %s1029_s29 }
 0x240   : > { %p765_p11 = pnand %p764_p8, %p1094_p9 }
 0x241   : > { %p770_p5 = por %p769_p0, %p768_p1 }
 0x242   : > { %p766_p13 = pneg %p765_p11 }
 0x243   : > { %p772_p10 = por %p771_p6, %p770_p5 }
 0x245   : > { %p773_p12 = pnand %p772_p10, %p766_p13 }
 0x247   : > { %776 = shalt.err (!%p773_p12)
}
 0x248   : > { %s832_s19 = smov 256   ;;  %s833_s20 = smov 16  }
 0x249   : > { %654 = dma.vmem_to_hbm [thread:$0]  (%p1094_p9), %s1024_s24, 512, %s1029_s29, %s1031_s16, %s832_s19, %s832_s19, %s833_s20  }
 0x24a PF: > { %p666_p2 = scmp.ge.s32.totalorder %s815_s15, 2  ;;  %s557_s25 = sand.u32 1, %s803_s12  }
 0x24b   : > { %p1095_p3 = scmp.ne.s32.totalorder %s1080_s23, 0  ;;  %s558_s26 = scalar_lea.sflag [#allocation6], %s557_s25 }
 0x24d   : > { %p661_p4 = pnand %p666_p2, %p1095_p3 }
 0x24f   : > { %798 = dma.done.wait (!%p661_p4), %s558_s26, 512  }
 0x250   : > { %800 = vsyncadd (!%p661_p4), %s558_s26, 4294966784  ;;  %p14_p7 = scmp.ge.s32.totalorder %s879_s18, 4   ;;  %s1096_s12 = smov %s807_s13 }
 0x251   : > { %s1097_s13 = smov %s811_s14  ;;  %s1098_s14 = smov %s890_s21 }
 0x252   : > { %s1099_s15 = smov %s879_s18  ;;  %16 = sbr.rel (!%p14_p7) target bundleno = 4 (0x4), region = 72 }
 0x259   :  { %563 = vsyncpa [#allocation5], 1 }
 0x25a   :  { %565 = vsyncpa [#allocation5 + $0x1], 1 }
 0x25b   :  { %566 = vsyncpa [#allocation6], 1 }
 0x25c   :  { %568 = vsyncpa [#allocation6 + $0x1], 1 }

</bundles_post_ra>
